<compile_context>
chip_gen: v6e
topology: v6e:2x2x1
jax: 0.10.0
libtpu: 0.0.40
codegen_flags: <defaults>
</compile_context>

<pallas_src>
import jax
import jax.numpy as jnp
from jax.experimental import pallas as pl
from jax.experimental.pallas import tpu as pltpu


def _linear_sigmoid_kernel(x_ref, w_ref, b_ref, o_ref):
    # x_ref: (TB, D)  batch tile          (pipelined / double-buffered)
    # w_ref: (1, D)   weight row          (constant index -> VMEM-resident)
    # b_ref: (1,)     bias scalar         (SMEM)
    # o_ref: (1, TB)  lane-dense output row
    x = x_ref[...]
    w = w_ref[...]
    # z[0, t] = sum_d w[0, d] * x[t, d]  -> (1, TB): batch lives on lanes, so
    # the result is produced directly in the lane-dense output layout (no
    # relayout, no masked stores).  f32 accumulation on the MXU.
    z = jax.lax.dot_general(
        w, x,
        dimension_numbers=(((1,), (1,)), ((), ())),
        preferred_element_type=jnp.float32,
    )
    z = z + b_ref[0]  # scalar bias add from SMEM
    # sigmoid(z) = 1 / (1 + exp(-z)): exp on the EUP, approximate reciprocal on
    # the EUP (vrcp) instead of a VALU divide.
    y = pl.reciprocal(1.0 + jnp.exp(-z), approx=True)
    o_ref[...] = y.astype(o_ref.dtype)


def _pick_block_rows(batch_rounded_128, input_dim, dtype_bytes=4,
                     vmem_budget_bytes=8 * 1024 * 1024):
    """Pick the per-step batch tile TB (a multiple of 128).

    Budget rule: the double-buffered (TB, D) x tiles must fit well inside the
    default scoped-VMEM limit on every generation (v5e is the tightest at
    16 MiB; v7x has 64 MiB physical).  Keep at least 2 grid steps so the
    pipeline actually overlaps DMA with compute.
    """
    tb = 128
    while (tb < 1024
           and tb * 2 < batch_rounded_128
           and 2 * (2 * tb) * input_dim * dtype_bytes < vmem_budget_bytes):
        tb *= 2
    return tb


def binary_classifier_forward(x, w, b, *, block_rows=None):
    """x: (B, D) f32, w: (1, D) f32 (PyTorch nn.Linear layout), b: (1,) f32.

    Returns sigmoid(x @ w.T + b) with shape (B, 1), matching the PyTorch module.
    """
    B, D = x.shape
    assert w.shape == (1, D), w.shape
    assert b.shape == (1,), b.shape

    b128 = pl.cdiv(B, 128) * 128
    tb = block_rows or _pick_block_rows(b128, D)
    b_pad = pl.cdiv(B, tb) * tb
    if b_pad != B:
        # Padded rows compute sigmoid(b) and are sliced off below; harmless.
        x = jnp.pad(x, ((0, b_pad - B), (0, 0)))
    num_tiles = b_pad // tb

    out = pl.pallas_call(
        _linear_sigmoid_kernel,
        out_shape=jax.ShapeDtypeStruct((1, b_pad), x.dtype),
        grid=(num_tiles,),
        in_specs=[
            # x: one (TB, D) tile per grid step -> double-buffered by Pallas.
            pl.BlockSpec((tb, D), lambda i: (i, 0)),
            # weight row: constant block index -> fetched once, stays in VMEM.
            pl.BlockSpec((1, D), lambda i: (0, 0)),
            # bias: whole (1,) array in SMEM, read as a scalar.
            pl.BlockSpec(memory_space=pltpu.MemorySpace.SMEM),
        ],
        # Lane-dense output: each step writes a contiguous (1, TB) row.
        out_specs=pl.BlockSpec((1, tb), lambda i: (0, i)),
        compiler_params=pltpu.CompilerParams(
            dimension_semantics=("parallel",),  # rows independent; v7x: 2 TCs
        ),
    )(x, w, b)

    # (1, B_pad) lane-dense row -> (B, 1) to match the PyTorch module output.
    return out.reshape(b_pad, 1)[:B]


if __name__ == "__main__":
    batch = 300         # exercises both multi-step tiling and the padding path
    input_dim = 32
    output_dim = 1

    key = jax.random.PRNGKey(0)
    kx, kw, kb = jax.random.split(key, 3)

    # Deterministic parameter init (mimics nn.Linear's U(-1/sqrt(in), 1/sqrt(in))).
    bound = 1.0 / (input_dim ** 0.5)
    w = jax.random.uniform(kw, (output_dim, input_dim), jnp.float32, -bound, bound)
    b = jax.random.uniform(kb, (output_dim,), jnp.float32, -bound, bound)
    x = jax.random.normal(kx, (batch, input_dim), jnp.float32)

    out = binary_classifier_forward(x, w, b)
    out = jax.block_until_ready(out)

    # Reference check in plain JAX.
    ref = jax.nn.sigmoid(x @ w.T + b)
    assert out.shape == (batch, output_dim), out.shape
    # Tolerance accounts for the EUP approximate reciprocal (approx=True);
    # outputs are in [0, 1] so 1e-2 absolute is a comfortable bound.
    assert jnp.allclose(out, ref, atol=1e-2, rtol=0.0), float(
        jnp.max(jnp.abs(out - ref)))

    print("KERNEL_OK")
</pallas_src>

<mosaic_0001>
module attributes {stable_mosaic.version = 11 : i64} {
  func.func @_linear_sigmoid_kernel(%arg0: i32, %arg1: memref<256x32xf32, #tpu.memory_space<vmem>>, %arg2: memref<1x32xf32, #tpu.memory_space<vmem>>, %arg3: memref<1xf32, #tpu.memory_space<smem>>, %arg4: memref<1x256xf32, #tpu.memory_space<vmem>>) attributes {dimension_semantics = [#tpu.dimension_semantics<parallel>], iteration_bounds = array<i64: 2>, scalar_prefetch = 0 : i64, scratch_operands = 0 : i64, tpu.core_type = #tpu.core_type<tc>, window_params = [{transform_indices = @transform_0, window_bounds = array<i64: 256, 32>}, {pipeline_mode = #tpu.pipeline_mode<synchronous>, transform_indices = @transform_1, window_bounds = array<i64: 1, 32>}, {transform_indices = @transform_2, window_bounds = array<i64: 1>}, {transform_indices = @transform_3, window_bounds = array<i64: 1, 256>}]} {
    %c0 = arith.constant 0 : index
    %c0_0 = arith.constant 0 : index
    %0 = vector.load %arg1[%c0, %c0_0] : memref<256x32xf32, #tpu.memory_space<vmem>>, vector<256x32xf32>
    %c0_1 = arith.constant 0 : index
    %c0_2 = arith.constant 0 : index
    %1 = vector.load %arg2[%c0_1, %c0_2] : memref<1x32xf32, #tpu.memory_space<vmem>>, vector<1x32xf32>
    %cst = arith.constant dense<0.000000e+00> : vector<1x256xf32>
    %2 = tpu.matmul %1, %0, %cst {dimension_numbers = #tpu.dot_dimension_numbers<[1], [1], [0], [0], [0, 0, 1, 0], [], []>} : vector<1x32xf32>, vector<256x32xf32>, vector<1x256xf32> -> vector<1x256xf32>
    %c0_3 = arith.constant 0 : index
    %3 = memref.load %arg3[%c0_3] : memref<1xf32, #tpu.memory_space<smem>>
    %4 = vector.broadcast %3 : f32 to vector<1x256xf32>
    %5 = arith.addf %2, %4 : vector<1x256xf32>
    %cst_4 = arith.constant 0.000000e+00 : f32
    %6 = vector.broadcast %cst_4 : f32 to vector<1x256xf32>
    %7 = arith.subf %6, %5 : vector<1x256xf32>
    %8 = math.exp %7 : vector<1x256xf32>
    %cst_5 = arith.constant 1.000000e+00 : f32
    %9 = vector.broadcast %cst_5 : f32 to vector<1x256xf32>
    %10 = arith.addf %9, %8 : vector<1x256xf32>
    %11 = tpu.reciprocal %10 {approx = true} : vector<1x256xf32> -> vector<1x256xf32>
    %c0_6 = arith.constant 0 : index
    %c0_7 = arith.constant 0 : index
    %12 = vector.load %arg4[%c0_6, %c0_7] : memref<1x256xf32, #tpu.memory_space<vmem>>, vector<1x256xf32>
    tpu.vector_store %arg4[%c0_6, %c0_7], %11 {strides = array<i32>} : memref<1x256xf32, #tpu.memory_space<vmem>>, vector<1x256xf32>,
    return
  }
  func.func @transform_0(%arg0: i32) -> (i32, i32) {
    %c0_i32 = arith.constant 0 : i32
    %c0_i32_0 = arith.constant 0 : i32
    return %arg0, %c0_i32 : i32, i32
  }
  func.func @transform_1(%arg0: i32) -> (i32, i32) {
    %c0_i32 = arith.constant 0 : i32
    %c0_i32_0 = arith.constant 0 : i32
    %c0_i32_1 = arith.constant 0 : i32
    return %c0_i32, %c0_i32_0 : i32, i32
  }
  func.func @transform_2(%arg0: i32) -> i32 {
    %c0_i32 = arith.constant 0 : i32
    %c0_i32_0 = arith.constant 0 : i32
    return %c0_i32 : i32
  }
  func.func @transform_3(%arg0: i32) -> (i32, i32) {
    %c0_i32 = arith.constant 0 : i32
    %c0_i32_0 = arith.constant 0 : i32
    return %c0_i32, %arg0 : i32, i32
  }
}

</mosaic_0001>

<bundles_post_ra>
// kernel: tpu_custom_call.1
= control target key start
LH: loop header
LB: loop body
LE: loop exit
PB: predicated region body
PF: predicated region fallthrough
CT: control target
= control target key end

     0   :  { %s862_s0 = inlined_call_operand.vmem [shape: f32[512,32], index: 0, kind: input, shape index: {}]   ;;  %s863_s1 = inlined_call_operand.vmem [shape: f32[1,32], index: 1, kind: input, shape index: {}]   ;;  %s864_s2 = inlined_call_operand.<no memory space> [shape: f32[1], index: 2, kind: input, shape index: {}]   ;;  %s865_s3 = inlined_call_operand.hbm [shape: f32[1,512], index: 3, kind: output, shape index: {}]  }
   0x1   :  { %8 = sst [smem:[#allocation2]] %s864_s2 }
   0x2   :  { %9 = vsyncpa [#allocation4], 0 }
   0x3   :  { %11 = vsyncpa [#allocation4 + $0x1], 0  ;;  %s701_s14 = smov 0   ;;  %s703_s15 = smov 0  }
   0x4   :  { %s705_s16 = smov 0   ;;  %s707_s17 = smov 0  }
   0x5 LB: > { %s485_s2 = sadd.s32 4294967295, %s674_s17   ;;  %s486_s18 = sadd.s32 4294967294, %s674_s17   ;;  %s674_s17 = sphi %s707_s17, %s871_s17   ;;  %s670_s16 = sphi %s705_s16, %s870_s16   ;;  %s666_s15 = sphi %s703_s15, %s869_s15   ;;  %s662_s14 = sphi %s701_s14, %s868_s14  }
   0x6   : > { %s724_s19 = sadd.s32 1, %s674_s17   ;;  %s92_s20 = sadd.s32 1, %s670_s16 }
   0x7   : > { %s89_s21 = ssub.s32 %s674_s17, %s724_s19  ;;  %p102_p0 = scmp.ne.s32.totalorder %s670_s16, %s666_s15 }
   0x8   : > { %p90_p1 = scmp.eq.s32.totalorder %s89_s21, 0  ;;  %p103_p2 = scmp.eq.s32.totalorder %s485_s2, 1 }
   0x9   : > { %p108_p3 = scmp.ne.s32.totalorder %s666_s15, %s662_s14  ;;  %p109_p4 = scmp.eq.s32.totalorder %s486_s18, 1 }
   0xa   : > { %s734_s22 = scalar_select %p90_p1, %s670_s16, %s92_s20  }
   0xb   : > { %p736_p5 = por %p103_p2, %p102_p0  ;;  %p740_p6 = por %p109_p4, %p108_p3 }
   0xc   : > { %p489_p7 = scmp.ge.s32.totalorder %s674_s17, 1  ;;  %p142_p8 = scmp.lt.s32.totalorder %s674_s17, 3 }
   0xe   : > { %p143_p9 = pnand %p489_p7, %p142_p8 }
   0xf   : > { %s746_s25 = sshll.u32 (!%p143_p9), %s485_s2, 5  ;;  %s206_s6 = sld [smem:[#allocation2]] (!%p143_p9) }
  0x10   : > { %146 = sbr.rel (%p143_p9) target bundleno = 340 (0x154), region = 32  ;;  %p167_p10 = scmp.lt.s32.totalorder (!%p143_p9), %s746_s25, 63 }
  0x11   : > { %s163_s7 = sand.u32 (!%p143_p9), 1, %s666_s15   ;;  %s425_s13 = scalar_lea.hbm (!%p143_p9), %s865_s3, %s746_s25 }
  0x12   : > { %s490_s8 = sshll.u32 (!%p143_p9), %s163_s7, 1  ;;  %s413_s2 = scalar_lea.sflag (!%p143_p9), [#allocation4], %s163_s7 }
  0x13   : > { %s165_s9 = scalar_lea.vmem (!%p143_p9), [#allocation3], %s490_s8  ;;  %s677_s20 = smov (!%p143_p9), [#allocation3]  }
  0x14   : > { %s427_s10 = sshll.u32 (!%p143_p9), %s165_s9, 4  ;;  %s618_s21 = sshll.u32 (!%p143_p9), %s677_s20, 4  ;;  %s428_s10 = int_to_ptr.vmem [resolvable:$true] %s427_s10  ;;  %s619_s21 = int_to_ptr.vmem [resolvable:$false] %s618_s21 }
  0x15   : > { %vm208_vm0 = vcmask 261120   ;;  %v751_v0 = vld [vmem:[%s863_s1] sm:$0x1]  ;;  %s168_s28 = scalar_select %p167_p10, %s746_s25, 63  ;;  %v207_v33 = vstv %s206_s6  ;;  %v676_v46 = vmov 1966171168   ;;  %v395_v48 = vlaneseq }
  0x16   : > { %564 = vmatprep.mubr.msk.f32.mxu0 %vm208_vm0, %v751_v0  ;;  %v393_v47 = vunpack.c.l.s4 %v676_v46  ;;  %s614_s18 = scalar_lea.vmem %s428_s10, 32  ;;  %s620_s26 = scalar_lea.vmem %s619_s21, 64 }
  0x17   : > { %s492_s29 = sshll.u32 %s168_s28, 3  ;;  %v396_v50 = vshrl.u32 %v395_v48, 7  ;;  %vm409_vm1 = vcmp.lt.s32.totalorder %v395_v48, 256  ;;  %p615_p11 = scmp.ne.s32.totalorder %s428_s10, %s614_s18 }
  0x18   : > { %s760_s5 = scalar_lea.vmem %s862_s0, %s492_s29  ;;  %v394_v49 = vunpack.c.0.s8 %v393_v47  ;;  %p621_p0 = scmp.lt.s32.totalorder %s428_s10, %s619_s21 }
  0x19   : > { %v204_v1 = vld [vmem:[%s760_s5 + $0xf8] sm:$0xff]  ;;  %v203_v3 = vld [vmem:[%s760_s5 + $0xf0] sm:$0xff]  ;;  %v202_v5 = vld [vmem:[%s760_s5 + $0xe8] sm:$0xff]  ;;  %p616_p12 = pnand %p615_p11, %p736_p5  ;;  %p622_p1 = scmp.lt.s32.totalorder %s620_s26, %s614_s18 }
  0x1a   : > { %v188_v2 = vld [vmem:[%s760_s5 + $0x78] sm:$0xff]  ;;  %532 = vmatprep.subr.msk.mxu0 %vm208_vm0, %v204_v1  ;;  %v187_v4 = vld [vmem:[%s760_s5 + $0x70] sm:$0xff]  ;;  %v186_v6 = vld [vmem:[%s760_s5 + $0x68] sm:$0xff]  ;;  %v397_v52 = vsub.s32 %v394_v49, %v396_v50 }
  0x1b   : > { %533 = vmatpush3.xpose.msk.msra.mxu0 %vm208_vm0, %v188_v2  ;;  %v201_v7 = vld [vmem:[%s760_s5 + $0xe0] sm:$0xff]  ;;  %v200_v9 = vld [vmem:[%s760_s5 + $0xd8] sm:$0xff]  ;;  %v199_v11 = vld [vmem:[%s760_s5 + $0xd0] sm:$0xff]  ;;  %p617_p13 = pneg %p616_p12  ;;  %p623_p2 = por %p622_p1, %p621_p0 }
  0x1c   : > { %534 = vmatprep.subr.msk.mxu0 %vm208_vm0, %v203_v3  ;;  %v185_v8 = vld [vmem:[%s760_s5 + $0x60] sm:$0xff]  ;;  %v184_v10 = vld [vmem:[%s760_s5 + $0x58] sm:$0xff]  ;;  %v183_v12 = vld [vmem:[%s760_s5 + $0x50] sm:$0xff] }
  0x1d   : > { %v198_v13 = vld [vmem:[%s760_s5 + $0xc8] sm:$0xff]  ;;  %v197_v15 = vld [vmem:[%s760_s5 + $0xc0] sm:$0xff]  ;;  %v196_v17 = vld [vmem:[%s760_s5 + $0xb8] sm:$0xff]  ;;  %p624_p3 = pnand %p623_p2, %p617_p13 }
  0x1e   : > { %v182_v14 = vld [vmem:[%s760_s5 + $0x48] sm:$0xff]  ;;  %v181_v16 = vld [vmem:[%s760_s5 + $0x40] sm:$0xff]  ;;  %v180_v18 = vld [vmem:[%s760_s5 + $0x38] sm:$0xff] }
  0x1f   : > { %535 = vmatpush3.xpose.msk.msra.mxu0 %vm208_vm0, %v187_v4  ;;  %v195_v19 = vld [vmem:[%s760_s5 + $0xb0] sm:$0xff]  ;;  %v194_v21 = vld [vmem:[%s760_s5 + $0xa8] sm:$0xff]  ;;  %v193_v23 = vld [vmem:[%s760_s5 + $0xa0] sm:$0xff] }
  0x20   : > { %536 = vmatprep.subr.msk.mxu0 %vm208_vm0, %v202_v5  ;;  %v179_v20 = vld [vmem:[%s760_s5 + $0x30] sm:$0xff]  ;;  %v178_v22 = vld [vmem:[%s760_s5 + $0x28] sm:$0xff]  ;;  %v177_v24 = vld [vmem:[%s760_s5 + $0x20] sm:$0xff] }
  0x21   : > { %v192_v25 = vld [vmem:[%s760_s5 + $0x98] sm:$0xff]  ;;  %v191_v27 = vld [vmem:[%s760_s5 + $0x90] sm:$0xff]  ;;  %v190_v29 = vld [vmem:[%s760_s5 + $0x88] sm:$0xff] }
  0x22   : > { %v176_v26 = vld [vmem:[%s760_s5 + $0x18] sm:$0xff]  ;;  %v175_v28 = vld [vmem:[%s760_s5 + $0x10] sm:$0xff]  ;;  %v174_v30 = vld [vmem:[%s760_s5 + $0x8] sm:$0xff] }
  0x23   : > { %537 = vmatpush3.xpose.msk.msra.mxu0 %vm208_vm0, %v186_v6  ;;  %v189_v31 = vld [vmem:[%s760_s5 + $0x80] sm:$0xff] }
  0x24   : > { %538 = vmatprep.subr.msk.mxu0 %vm208_vm0, %v201_v7  ;;  %v173_v32 = vld [vmem:[%s760_s5] sm:$0xff] }
  0x27   : > { %539 = vmatpush3.xpose.msk.msra.mxu0 %vm208_vm0, %v185_v8 }
  0x28   : > { %540 = vmatprep.subr.msk.mxu0 %vm208_vm0, %v200_v9 }
  0x2b   : > { %541 = vmatpush3.xpose.msk.msra.mxu0 %vm208_vm0, %v184_v10 }
  0x2c   : > { %542 = vmatprep.subr.msk.mxu0 %vm208_vm0, %v199_v11 }
  0x2f   : > { %543 = vmatpush3.xpose.msk.msra.mxu0 %vm208_vm0, %v183_v12 }
  0x30   : > { %544 = vmatprep.subr.msk.mxu0 %vm208_vm0, %v198_v13 }
  0x33   : > { %545 = vmatpush3.xpose.msk.msra.mxu0 %vm208_vm0, %v182_v14 }
  0x34   : > { %546 = vmatprep.subr.msk.mxu0 %vm208_vm0, %v197_v15 }
  0x37   : > { %547 = vmatpush3.xpose.msk.msra.mxu0 %vm208_vm0, %v181_v16 }
  0x38   : > { %548 = vmatprep.subr.msk.mxu0 %vm208_vm0, %v196_v17 }
  0x3b   : > { %549 = vmatpush3.xpose.msk.msra.mxu0 %vm208_vm0, %v180_v18 }
  0x3c   : > { %550 = vmatprep.subr.msk.mxu0 %vm208_vm0, %v195_v19 }
  0x3f   : > { %551 = vmatpush3.xpose.msk.msra.mxu0 %vm208_vm0, %v179_v20 }
  0x40   : > { %552 = vmatprep.subr.msk.mxu0 %vm208_vm0, %v194_v21 }
  0x43   : > { %553 = vmatpush3.xpose.msk.msra.mxu0 %vm208_vm0, %v178_v22 }
  0x44   : > { %554 = vmatprep.subr.msk.mxu0 %vm208_vm0, %v193_v23 }
  0x47   : > { %555 = vmatpush3.xpose.msk.msra.mxu0 %vm208_vm0, %v177_v24 }
  0x48   : > { %556 = vmatprep.subr.msk.mxu0 %vm208_vm0, %v192_v25 }
  0x4b   : > { %557 = vmatpush3.xpose.msk.msra.mxu0 %vm208_vm0, %v176_v26 }
  0x4c   : > { %558 = vmatprep.subr.msk.mxu0 %vm208_vm0, %v191_v27 }
  0x4f   : > { %559 = vmatpush3.xpose.msk.msra.mxu0 %vm208_vm0, %v175_v28 }
  0x50   : > { %560 = vmatprep.subr.msk.mxu0 %vm208_vm0, %v190_v29 }
  0x53   : > { %561 = vmatpush3.xpose.msk.msra.mxu0 %vm208_vm0, %v174_v30 }
  0x54   : > { %562 = vmatprep.subr.msk.mxu0 %vm208_vm0, %v189_v31 }
  0x57   : > { %563 = vmatpush3.xpose.msk.msra.mxu0 %vm208_vm0, %v173_v32 }
  0x5a   : > { %565 = vmatmul.mubr.msk.f32.vlgmr.msra.gmra.mxu0 %vm208_vm0, %v751_v0 }
 0x11a   : > { %v374_v34 = vpop.f32.mrf.mxu0 }
 0x11b   : > { %v375_v35 = vadd.f32 %v374_v34, %v207_v33 }
 0x11c   : > { %v376_v36 = vpop.f32.mrf.mxu0 }
 0x11d   : > { %v379_v37 = vsub.f32 0.0, %v375_v35  ;;  %v377_v38 = vadd.f32 %v376_v36, %v207_v33 }
 0x11f   : > { %v381_v39 = vmul.f32 1.442695, %v379_v37  ;;  %v380_v40 = vsub.f32 0.0, %v377_v38 }
 0x121   : > { %606 = vpow2.f32 %v381_v39  ;;  %v383_v41 = vmul.f32 1.442695, %v380_v40 }
 0x123   : > { %608 = vpow2.f32 %v383_v41 }
 0x12e   : > { %v607_v42 = vpop.eup %606 }
 0x12f   : > { %v385_v43 = vadd.f32 1.0, %v607_v42 }
 0x130   : > { %v609_v44 = vpop.eup %608 }
 0x131   : > { %v386_v45 = vadd.f32 1.0, %v609_v44  ;;  %610 = vrcp.f32 %v385_v43 }
 0x133   : > { %612 = vrcp.f32 %v386_v45 }
 0x13e   : > { %v611_v51 = vpop.eup %610 }
 0x140   : > { %v613_v53 = vpop.eup %612 }
 0x141   : > { %v391_v54 = vcombine.low %v611_v51, %v613_v53 }
 0x143   : > { %v398_v55 = vrot.slane %v391_v54, %v397_v52 }
 0x145   : > { %v405_v56 = vrot.slane %v398_v55, %v397_v52 }
 0x147   : > { %411 = vst.msk [vmem:[%s165_s9] sm:$0x3] %vm409_vm1, %v405_v56 }
 0x148   : > { %627 = shalt.err (!%p624_p3)
}
 0x149   : > { %s628_s27 = scalar_lea.hbm %s425_s13, 32  ;;  %s632_s29 = scalar_lea.hbm %s865_s3, 64 }
 0x14a   : > { %p629_p4 = scmp.ne.s32.totalorder %s425_s13, %s628_s27  ;;  %p633_p9 = scmp.lt.s32.totalorder %s425_s13, %s865_s3 }
 0x14b   : > { %p634_p10 = scmp.lt.s32.totalorder %s632_s29, %s628_s27 }
 0x14c   : > { %p630_p7 = pnand %p629_p4, %p736_p5 }
 0x14d   : > { %p635_p11 = por %p634_p10, %p633_p9 }
 0x14e   : > { %p631_p8 = pneg %p630_p7 }
 0x150   : > { %p636_p12 = pnand %p635_p11, %p631_p8 }
 0x152   : > { %639 = shalt.err (!%p636_p12)
}
 0x153   : > { %566 = dma.vmem_to_hbm [thread:$0]  (%p736_p5), %s428_s10, 32, %s425_s13, %s413_s2  }
 0x154 PF: > { %p572_p13 = scmp.ge.s32.totalorder %s674_s17, 2  ;;  %s439_s5 = sand.u32 1, %s662_s14  }
 0x155   : > { %s440_s6 = scalar_lea.sflag [#allocation4], %s439_s5 }
 0x156   : > { %p569_p0 = pnand %p572_p13, %p740_p6 }
 0x158   : > { %p570_p1 = pneg %p569_p0 }
 0x15a   : > { %657 = dma.done.wait (%p570_p1), %s440_s6, 32  }
 0x15b   : > { %659 = vsyncadd (%p570_p1), %s440_s6, 4294967264  ;;  %p14_p2 = scmp.ge.s32.totalorder %s724_s19, 4   ;;  %s868_s14 = smov %s666_s15 }
 0x15c   : > { %s869_s15 = smov %s670_s16  ;;  %s870_s16 = smov %s734_s22 }
 0x15d   : > { %s871_s17 = smov %s724_s19  ;;  %16 = sbr.rel (!%p14_p2) target bundleno = 5 (0x5), region = 67 }
 0x162   :  { %445 = vsyncpa [#allocation4], 1 }
 0x163   :  { %447 = vsyncpa [#allocation4 + $0x1], 1 }

</bundles_post_ra>
